<compile_context>
chip_gen: v5e
topology: v5e:2x2
jax: 0.10.0
libtpu: 0.0.40
codegen_flags: <defaults>
</compile_context>

<pallas_src>
import jax
import jax.numpy as jnp
import numpy as np
from jax import lax
from jax.experimental import pallas as pl
from jax.experimental.pallas import tpu as pltpu


def _round_up(x, m):
    return ((x + m - 1) // m) * m


def _attention_kernel(hid_ref, enc_ref, lens_ref, we_ref, v_ref, out_ref):
    TB, S, E = enc_ref.shape          # batch tile, 8-padded seq, real en_hidden
    D = we_ref.shape[1]               # real de_hidden

    # energy = tanh(hid_part + enc @ We); hid_part = hid_cat @ Wh + b (hoisted).
    # One lane-dense MXU GEMM over the whole batch tile, bf16 in / f32 acc.
    enc2d = enc_ref[...].reshape(TB * S, E)                    # leading-dim collapse: free
    enc_part = jnp.dot(enc2d, we_ref[...],
                       preferred_element_type=jnp.float32)     # (TB*S, D) f32
    energy = jnp.tanh(enc_part.reshape(TB, S, D)
                      + hid_ref[...][:, None, :])              # (TB, S, D) f32

    # scores[b, s] = v . energy[b, s, :]   (VPU multiply + XLU lane-reduce)
    scores = jnp.sum(energy * v_ref[...][None, :, :], axis=-1)  # (TB, S) f32

    # mask positions >= x_lens (int compare), numerically-stable softmax over S.
    lens = lens_ref[...]                                        # (TB, 1) int32
    idx = lax.broadcasted_iota(jnp.int32, scores.shape, 1)
    masked = jnp.where(idx < lens, scores, -jnp.inf)

    m = jnp.max(masked, axis=-1, keepdims=True)
    e = jnp.exp(masked - m)
    denom = jnp.sum(e, axis=-1, keepdims=True)
    # reciprocal-then-multiply: one recip per row instead of TB*S divides.
    out_ref[...] = e * pl.reciprocal(denom, approx=False)


def lstm_rnn_decoder_attention(hidden, encoder_output, x_lens, params):
    """hidden: (h, c) each (1, B, D); encoder_output: (B, S, E); x_lens: (B,) int."""
    h, c = hidden
    wh, we, b, v = params              # Wh (2D, D), We (E, D), b (D,), v (D,)
    B, S, E = encoder_output.shape
    D = wh.shape[1]

    S_p = _round_up(S, 8)              # enc sublane alignment only (no 128 pad)
    B8 = _round_up(max(B, 8), 8)

    # ---- batch tile sizing: ~32 MiB budget including the double-buffered enc
    #      block and the f32 energy temporaries (use lane-padded dims, since the
    #      VMEM layout pads the minor dim to 128 regardless of logical size).
    E_l = _round_up(E, 128)
    D_l = _round_up(D, 128)
    S_l = _round_up(S_p, 128)
    per_row = (2 * S_p * E_l * 2       # enc block, bf16, double-buffered
               + 2 * S_p * D_l * 4     # enc_part + energy f32 temporaries
               + 2 * S_l * 4           # score/out rows
               + 2 * D_l * 4)          # hid_part block
    budget = 32 * 1024 * 1024
    TB = max(8, min((budget // per_row) // 8 * 8, B8))
    # v7x has 2 TensorCores sharing the "parallel" batch axis: keep >= 2 steps.
    if B8 >= 16:
        TB = min(TB, _round_up((B8 + 1) // 2, 8))
    # Minimize phantom batch rows without shrinking the tile by more than 2x.
    best_tb, best_pad = TB, _round_up(B8, TB)
    cand = TB - 8
    while cand >= max(8, TB // 2):
        pad = _round_up(B8, cand)
        if pad < best_pad:
            best_tb, best_pad = cand, pad
        cand -= 8
    TB, B_pad = best_tb, best_pad

    # ---- wrapper-side prep (all tiny relative to the enc stream) ------------
    f32 = jnp.float32
    hid_cat = jnp.concatenate([h[0], c[0]], axis=-1).astype(f32)       # (B, 2D)
    # Hoisted mini-GEMM + bias: (B, 2D) @ (2D, D) + b  ->  (B, D), stays f32.
    hid_part = hid_cat @ wh.astype(f32) + b.astype(f32)[None, :]
    hid_part = jnp.pad(hid_part, ((0, B_pad - B), (0, 0)))

    enc = jnp.pad(encoder_output.astype(jnp.bfloat16),
                  ((0, B_pad - B), (0, S_p - S), (0, 0)))              # (B_pad,S_p,E)
    we_bf = we.astype(jnp.bfloat16)                                    # (E, D)
    v_row = v.astype(f32).reshape(1, D)                                # (1, D)
    # padded batch rows get length 1 (finite softmax, sliced off below);
    # zero-length real rows give NaN by design, matching the torch module.
    lens = jnp.pad(x_lens.astype(jnp.int32), (0, B_pad - B),
                   constant_values=1).reshape(B_pad, 1)

    grid = (B_pad // TB,)
    out = pl.pallas_call(
        _attention_kernel,
        out_shape=jax.ShapeDtypeStruct((B_pad, S_p), jnp.float32),
        grid=grid,
        in_specs=[
            pl.BlockSpec((TB, D), lambda i: (i, 0)),           # hid_part (f32)
            pl.BlockSpec((TB, S_p, E), lambda i: (i, 0, 0)),   # encoder (bf16)
            pl.BlockSpec((TB, 1), lambda i: (i, 0)),           # lengths (int32)
            pl.BlockSpec((E, D), lambda i: (0, 0)),            # We (bf16, resident)
            pl.BlockSpec((1, D), lambda i: (0, 0)),            # v (f32, resident)
        ],
        out_specs=pl.BlockSpec((TB, S_p), lambda i: (i, 0)),
        compiler_params=pltpu.CompilerParams(
            dimension_semantics=("parallel",),
            vmem_limit_bytes=48 * 1024 * 1024,
        ),
    )(hid_part, enc, lens, we_bf, v_row)

    # slice off batch/sequence padding; matches F.softmax(...).unsqueeze(1)
    return out[:B, :S][:, None, :]


def reference(hidden, encoder_output, x_lens, params):
    """Pure-JAX f32 reference mirroring the PyTorch forward."""
    h, c = hidden
    wh, we, b, v = params
    hid_cat = jnp.concatenate([h[0], c[0]], axis=-1)                        # (B, 2D)
    energy = jnp.tanh(jnp.einsum('bse,ed->bsd', encoder_output, we)
                      + (hid_cat @ wh)[:, None, :] + b[None, None, :])      # (B, S, D)
    scores = jnp.einsum('bsd,d->bs', energy, v)                             # (B, S)
    S = encoder_output.shape[1]
    idx = jnp.arange(S, dtype=jnp.float32)[None, :]
    mask = idx < x_lens.astype(jnp.float32)[:, None]
    masked = jnp.where(mask, scores, -jnp.inf)
    return jax.nn.softmax(masked, axis=1)[:, None, :]


if __name__ == "__main__":
    # Small shapes consistent with the module.
    B, S = 2, 8
    EN_HIDDEN, DE_HIDDEN = 32, 32
    IN_DIM = 2 * DE_HIDDEN + EN_HIDDEN

    key = jax.random.PRNGKey(0)
    k_h, k_c, k_enc, k_w, k_b, k_v = jax.random.split(key, 6)

    # Module parameters (deterministic synthetic init).
    # torch Linear(IN_DIM, DE_HIDDEN): weight (DE, IN_DIM), bias (DE,)
    w_full = jax.random.normal(k_w, (DE_HIDDEN, IN_DIM), jnp.float32) * (1.0 / np.sqrt(IN_DIM))
    b_attn = jax.random.normal(k_b, (DE_HIDDEN,), jnp.float32) * (1.0 / np.sqrt(IN_DIM))
    # self.v ~ Normal(0, 1/sqrt(DE_HIDDEN))
    v_param = jax.random.normal(k_v, (DE_HIDDEN,), jnp.float32) * (1.0 / np.sqrt(DE_HIDDEN))

    # Split / transpose the Linear weight: x @ W^T == hid @ Wh + enc @ We
    wh = jnp.transpose(w_full[:, :2 * DE_HIDDEN])   # (2D, D)
    we = jnp.transpose(w_full[:, 2 * DE_HIDDEN:])   # (E, D)
    params = (wh, we, b_attn, v_param)

    # Inputs.
    h = jax.random.normal(k_h, (1, B, DE_HIDDEN), jnp.float32)
    c = jax.random.normal(k_c, (1, B, DE_HIDDEN), jnp.float32)
    encoder_output = jax.random.normal(k_enc, (B, S, EN_HIDDEN), jnp.float32)
    x_lens = jnp.array([5, 8], dtype=jnp.int32)     # valid lengths per batch element

    out = lstm_rnn_decoder_attention((h, c), encoder_output, x_lens, params)
    out = jax.block_until_ready(out)

    ref = reference((h, c), encoder_output, x_lens, params)
    assert out.shape == (B, 1, S)
    # bf16 MXU inputs -> loosened tolerance vs the f32 reference.
    np.testing.assert_allclose(np.asarray(out), np.asarray(ref), rtol=2e-2, atol=2e-2)
    # masked positions must have exactly zero attention weight (exp(-inf) == 0)
    assert float(np.asarray(out)[0, 0, 5:].sum()) == 0.0

    print("KERNEL_OK")
</pallas_src>

<mosaic_0001>
module attributes {stable_mosaic.version = 11 : i64} {
  func.func @_attention_kernel(%arg0: i32, %arg1: memref<8x32xf32, #tpu.memory_space<vmem>>, %arg2: memref<8x8x32xbf16, #tpu.memory_space<vmem>>, %arg3: memref<8x1xi32, #tpu.memory_space<vmem>>, %arg4: memref<32x32xbf16, #tpu.memory_space<vmem>>, %arg5: memref<1x32xf32, #tpu.memory_space<vmem>>, %arg6: memref<8x8xf32, #tpu.memory_space<vmem>>) attributes {dimension_semantics = [#tpu.dimension_semantics<parallel>], iteration_bounds = array<i64: 1>, scalar_prefetch = 0 : i64, scratch_operands = 0 : i64, tpu.core_type = #tpu.core_type<tc>, window_params = [{transform_indices = @transform_0, window_bounds = array<i64: 8, 32>}, {transform_indices = @transform_1, window_bounds = array<i64: 8, 8, 32>}, {transform_indices = @transform_2, window_bounds = array<i64: 8, 1>}, {pipeline_mode = #tpu.pipeline_mode<synchronous>, transform_indices = @transform_3, window_bounds = array<i64: 32, 32>}, {pipeline_mode = #tpu.pipeline_mode<synchronous>, transform_indices = @transform_4, window_bounds = array<i64: 1, 32>}, {transform_indices = @transform_5, window_bounds = array<i64: 8, 8>}]} {
    %c0 = arith.constant 0 : index
    %c0_0 = arith.constant 0 : index
    %c0_1 = arith.constant 0 : index
    %0 = vector.load %arg2[%c0, %c0_0, %c0_1] : memref<8x8x32xbf16, #tpu.memory_space<vmem>>, vector<8x8x32xbf16>
    %1 = vector.shape_cast %0 : vector<8x8x32xbf16> to vector<64x32xbf16>
    %c0_2 = arith.constant 0 : index
    %c0_3 = arith.constant 0 : index
    %2 = vector.load %arg4[%c0_2, %c0_3] : memref<32x32xbf16, #tpu.memory_space<vmem>>, vector<32x32xbf16>
    %cst = arith.constant dense<0.000000e+00> : vector<64x32xf32>
    %3 = tpu.matmul %1, %2, %cst {dimension_numbers = #tpu.dot_dimension_numbers<[1], [0], [0], [1], [0, 0, 1, 1], [], []>} : vector<64x32xbf16>, vector<32x32xbf16>, vector<64x32xf32> -> vector<64x32xf32>
    %4 = vector.shape_cast %3 : vector<64x32xf32> to vector<8x8x32xf32>
    %c0_4 = arith.constant 0 : index
    %c0_5 = arith.constant 0 : index
    %5 = vector.load %arg1[%c0_4, %c0_5] : memref<8x32xf32, #tpu.memory_space<vmem>>, vector<8x32xf32>
    %6 = vector.shape_cast %5 : vector<8x32xf32> to vector<8x1x32xf32>
    %7 = vector.broadcast %6 : vector<8x1x32xf32> to vector<8x8x32xf32>
    %8 = arith.addf %4, %7 : vector<8x8x32xf32>
    %9 = math.tanh %8 : vector<8x8x32xf32>
    %c0_6 = arith.constant 0 : index
    %c0_7 = arith.constant 0 : index
    %10 = vector.load %arg5[%c0_6, %c0_7] : memref<1x32xf32, #tpu.memory_space<vmem>>, vector<1x32xf32>
    %11 = vector.shape_cast %10 : vector<1x32xf32> to vector<1x1x32xf32>
    %12 = vector.broadcast %11 : vector<1x1x32xf32> to vector<8x8x32xf32>
    %13 = arith.mulf %9, %12 : vector<8x8x32xf32>
    %cst_8 = arith.constant dense<0.000000e+00> : vector<8x8xf32>
    %14 = vector.multi_reduction <add>, %13, %cst_8 [2] : vector<8x8x32xf32> to vector<8x8xf32>
    %c0_9 = arith.constant 0 : index
    %c0_10 = arith.constant 0 : index
    %15 = vector.load %arg3[%c0_9, %c0_10] : memref<8x1xi32, #tpu.memory_space<vmem>>, vector<8x1xi32>
    %16 = tpu.iota {dimensions = array<i32: 1>} : vector<8x8xi32>
    %17 = vector.broadcast %15 : vector<8x1xi32> to vector<8x8xi32>
    %18 = arith.cmpi slt, %16, %17 : vector<8x8xi32>
    %cst_11 = arith.constant 0xFF800000 : f32
    %19 = vector.broadcast %cst_11 : f32 to vector<8x8xf32>
    %20 = arith.select %18, %14, %19 : vector<8x8xi1>, vector<8x8xf32>
    %cst_12 = arith.constant dense<0xFF800000> : vector<8xf32>
    %21 = vector.multi_reduction <maximumf>, %20, %cst_12 [1] : vector<8x8xf32> to vector<8xf32>
    %22 = vector.shape_cast %21 : vector<8xf32> to vector<8x1xf32>
    %23 = vector.broadcast %22 : vector<8x1xf32> to vector<8x8xf32>
    %24 = arith.subf %20, %23 : vector<8x8xf32>
    %25 = math.exp %24 : vector<8x8xf32>
    %cst_13 = arith.constant dense<0.000000e+00> : vector<8xf32>
    %26 = vector.multi_reduction <add>, %25, %cst_13 [1] : vector<8x8xf32> to vector<8xf32>
    %27 = vector.shape_cast %26 : vector<8xf32> to vector<8x1xf32>
    %28 = tpu.reciprocal %27 : vector<8x1xf32> -> vector<8x1xf32>
    %29 = vector.broadcast %28 : vector<8x1xf32> to vector<8x8xf32>
    %30 = arith.mulf %25, %29 : vector<8x8xf32>
    %c0_14 = arith.constant 0 : index
    %c0_15 = arith.constant 0 : index
    %31 = vector.load %arg6[%c0_14, %c0_15] : memref<8x8xf32, #tpu.memory_space<vmem>>, vector<8x8xf32>
    tpu.vector_store %arg6[%c0_14, %c0_15], %30 {strides = array<i32>} : memref<8x8xf32, #tpu.memory_space<vmem>>, vector<8x8xf32>,
    return
  }
  func.func @transform_0(%arg0: i32) -> (i32, i32) {
    %c0_i32 = arith.constant 0 : i32
    %c0_i32_0 = arith.constant 0 : i32
    return %arg0, %c0_i32 : i32, i32
  }
  func.func @transform_1(%arg0: i32) -> (i32, i32, i32) {
    %c0_i32 = arith.constant 0 : i32
    %c0_i32_0 = arith.constant 0 : i32
    %c0_i32_1 = arith.constant 0 : i32
    return %arg0, %c0_i32, %c0_i32_0 : i32, i32, i32
  }
  func.func @transform_2(%arg0: i32) -> (i32, i32) {
    %c0_i32 = arith.constant 0 : i32
    %c0_i32_0 = arith.constant 0 : i32
    return %arg0, %c0_i32 : i32, i32
  }
  func.func @transform_3(%arg0: i32) -> (i32, i32) {
    %c0_i32 = arith.constant 0 : i32
    %c0_i32_0 = arith.constant 0 : i32
    %c0_i32_1 = arith.constant 0 : i32
    return %c0_i32, %c0_i32_0 : i32, i32
  }
  func.func @transform_4(%arg0: i32) -> (i32, i32) {
    %c0_i32 = arith.constant 0 : i32
    %c0_i32_0 = arith.constant 0 : i32
    %c0_i32_1 = arith.constant 0 : i32
    return %c0_i32, %c0_i32_0 : i32, i32
  }
  func.func @transform_5(%arg0: i32) -> (i32, i32) {
    %c0_i32 = arith.constant 0 : i32
    %c0_i32_0 = arith.constant 0 : i32
    return %arg0, %c0_i32 : i32, i32
  }
}

</mosaic_0001>

<bundles_post_ra>
// kernel: tpu_custom_call.1
= control target key start
LH: loop header
LB: loop body
LE: loop exit
PB: predicated region body
PF: predicated region fallthrough
CT: control target
= control target key end

     0   :  { %10 = vsyncpa [#allocation3], 0  ;;  %s516_s0 = inlined_call_operand.vmem [shape: f32[8,32], index: 0, kind: input, shape index: {}]   ;;  %s517_s1 = inlined_call_operand.hbm [shape: bf16[8,8,32], index: 1, kind: input, shape index: {}]   ;;  %s518_s2 = inlined_call_operand.vmem [shape: s32[8,1], index: 2, kind: input, shape index: {}]   ;;  %s519_s3 = inlined_call_operand.hbm [shape: bf16[32,32], index: 3, kind: input, shape index: {}]   ;;  %s520_s4 = inlined_call_operand.vmem [shape: f32[1,32], index: 4, kind: input, shape index: {}]   ;;  %s521_s5 = inlined_call_operand.hbm [shape: f32[8,8], index: 5, kind: output, shape index: {}]  }
   0x1   :  { %11 = vsyncpa [#allocation6], 0 }
   0x2   :  { %12 = vsyncpa [#allocation4], 0  ;;  %s19_s20 = sshll.u32 %s517_s1, 4  ;;  %s447_s21 = smov [#allocation2]   ;;  %s20_s20 = int_to_ptr.hbm [resolvable:$true] %s19_s20 }
   0x3   :  { %s21_s22 = sshll.u32 %s447_s21, 4  ;;  %s34_s25 = sshll.u32 %s519_s3, 4  ;;  %s22_s22 = int_to_ptr.vmem [resolvable:$true] %s21_s22  ;;  %s35_s25 = int_to_ptr.hbm [resolvable:$true] %s34_s25 }
   0x4   :  { %s448_s26 = smov 64   ;;  %s449_s27 = smov 4  }
   0x5   :  { %27 = dma.hbm_to_vmem [thread:$0]  %s20_s20, 512, %s22_s22, [#allocation3], %s448_s26, %s448_s26, %s449_s27  }
   0x6   :  { %s450_s28 = smov [#allocation5]  }
   0x7   :  { %s36_s29 = sshll.u32 %s450_s28, 4  ;;  %s37_s29 = int_to_ptr.vmem [resolvable:$true] %s36_s29 }
   0x8   :  { %42 = dma.hbm_to_vmem [thread:$0]  %s35_s25, 256, %s37_s29, [#allocation6], %s448_s26, %s448_s26, %s449_s27  }
   0x9   :  { %441 = dma.done.wait [#allocation3], 512  }
   0xa   :  { %442 = vsyncadd [#allocation3], 4294966784 }
   0xb   :  { %443 = dma.done.wait [#allocation6], 256  }
   0xc   :  { %444 = vsyncadd [#allocation6], 4294967040  ;;  %v333_v0 = vld [vmem:[#allocation5 + $0x8] sm:$0xff]  ;;  %v332_v1 = vld [vmem:[#allocation5] sm:$0xff]  ;;  %vm98_vm0 = vcmask 261120   ;;  %v451_v13 = vmov 0  }
   0xd   :  { %117 = vmatpush.bf16.msra.mxu0 %v333_v0  ;;  %334 = vmatpush.bf16.msra.mxu1 %v333_v0  ;;  %v328_v2 = vld [vmem:[#allocation2] sm:$0xff]  ;;  %v329_v3 = vld [vmem:[#allocation2 + $0x8] sm:$0xff]  ;;  %v330_v4 = vld [vmem:[#allocation2 + $0x10] sm:$0xff]  ;;  %vm240_vm1 = vcmask 1041409   ;;  %vm242_vm2 = vcmask 1042434   ;;  %vm244_vm3 = vcmask 1043459  }
   0xe   :  { %335 = vmatpush.bf16.msra.mxu2 %v333_v0  ;;  %336 = vmatpush.bf16.msra.mxu3 %v333_v0  ;;  %v331_v5 = vld [vmem:[#allocation2 + $0x18] sm:$0xff]  ;;  %v140_v6 = vld [vmem:[%s516_s0] sm:$0xff]  ;;  %vm246_vm4 = vcmask 1044484   ;;  %vm248_vm5 = vcmask 1045509   ;;  %vm250_vm6 = vcmask 1046534   ;;  %vm252_vm7 = vcmask 1047559  }
   0xf   :  { %v143_v7 = vrot.slane %v140_v6, 2  ;;  %v149_v8 = vperm.slane %v140_v6, 0  ;;  %v145_v12 = vrot.slane %v140_v6, 4  ;;  %346 = vset.pattern.permute.xlu2 %v451_v13  ;;  %347 = vset.pattern.permute.xlu0 %v451_v13  ;;  %v142_v16 = vrot.slane %v140_v6, 1  ;;  %v348_v22 = vld [vmem:[%s520_s4] ss:$0 sm:$0xff] }
  0x10   :  { %v144_v17 = vrot.slane %v140_v6, 3  ;;  %v147_v19 = vrot.slane %v140_v6, 6  ;;  %v146_v25 = vrot.slane %v140_v6, 5  ;;  %v148_v30 = vrot.slane %v140_v6, 7  ;;  %v217_v0 = vld [vmem:[%s518_s2] sm:$0xff]  ;;  %s452_s2 = smov [#allocation7]  }
  0x11   :  { %118 = vmatpush.bf16.msra.mxu0 %v332_v1  ;;  %337 = vmatpush.bf16.msra.mxu1 %v332_v1  ;;  %v151_v9 = vperm.slane %v143_v7, 0  ;;  %v153_v18 = vperm.slane %v145_v12, 0  ;;  %v150_v20 = vperm.slane %v142_v16, 0  ;;  %vm256_vm8 = vcmask 64512   ;;  %s287_s7 = sshll.u32 %s452_s2, 4  ;;  %s289_s10 = sshll.u32 %s521_s5, 4  ;;  %s288_s7 = int_to_ptr.vmem [resolvable:$true] %s287_s7  ;;  %s290_s10 = int_to_ptr.hbm [resolvable:$true] %s289_s10 }
  0x12   :  { %338 = vmatpush.bf16.msra.mxu2 %v332_v1  ;;  %339 = vmatpush.bf16.msra.mxu3 %v332_v1  ;;  %v152_v21 = vperm.slane %v144_v17, 0  ;;  %v155_v27 = vperm.slane %v147_v19, 0  ;;  %v154_v37 = vperm.slane %v146_v25, 0  ;;  %v156_v40 = vperm.slane %v148_v30, 0 }
  0x14   :  { %324 = vmatmul.msk.bf16.vlgmr.msra.gmra.mxu0 %vm98_vm0, %v328_v2  ;;  %325 = vmatmul.msk.bf16.vlgmr.msra.gmra.mxu1 %vm98_vm0, %v329_v3  ;;  %v218_v3 = vlaneseq }
  0x15   :  { %326 = vmatmul.msk.bf16.vlgmr.msra.gmra.mxu2 %vm98_vm0, %v330_v4  ;;  %327 = vmatmul.msk.bf16.vlgmr.msra.gmra.mxu3 %vm98_vm0, %v331_v5 }
  0x16   :  { %v219_v4 = vand.u32 127, %v218_v3 }
  0x91   :  { %v120_v10 = vpop.f32.mrf.mxu0  ;;  %v125_v11 = vpop.f32.mrf.mxu1 }
  0x92   :  { %v165_v14 = vadd.f32 %v149_v8, %v120_v10  ;;  %v167_v15 = vadd.f32 %v151_v9, %v125_v11 }
  0x94   :  { %349 = vtanh.f32 %v165_v14 }
  0x95   :  { %351 = vtanh.f32 %v167_v15 }
  0x98   :  { %v130_v23 = vpop.f32.mrf.mxu2  ;;  %v135_v24 = vpop.f32.mrf.mxu3 }
  0x99   :  { %v169_v26 = vadd.f32 %v153_v18, %v130_v23  ;;  %v122_v28 = vpop.f32.mrf.mxu0  ;;  %v127_v29 = vpop.f32.mrf.mxu1  ;;  %v171_v38 = vadd.f32 %v155_v27, %v135_v24 }
  0x9a   :  { %v350_v31 = vpop.eup %349  ;;  %v166_v32 = vadd.f32 %v150_v20, %v122_v28  ;;  %v168_v33 = vadd.f32 %v152_v21, %v127_v29 }
  0x9b   :  { %v352_v34 = vpop.eup %351  ;;  %353 = vtanh.f32 %v169_v26  ;;  %v185_v35 = vmul.f32 %v350_v31, %v348_v22 }
  0x9c   :  { %v187_v36 = vmul.f32 %v352_v34, %v348_v22  ;;  %355 = vtanh.f32 %v166_v32 }
  0x9d   :  { %v193_v39 = vsel %vm98_vm0, %v185_v35, 0.0  ;;  %357 = vtanh.f32 %v168_v33 }
  0x9e   :  { %v199_v41 = vsel %vm98_vm0, %v187_v36, 0.0  ;;  %194 = vadd.xlane.f32.xlu0 %v193_v39  ;;  %359 = vtanh.f32 %v171_v38 }
  0x9f   :  { %200 = vadd.xlane.f32.xlu1 %v199_v41 }
  0xa0   :  { %v132_v42 = vpop.f32.mrf.mxu2  ;;  %v137_v43 = vpop.f32.mrf.mxu3 }
  0xa1   :  { %v354_v44 = vpop.eup %353  ;;  %v170_v45 = vadd.f32 %v154_v37, %v132_v42  ;;  %v172_v46 = vadd.f32 %v156_v40, %v137_v43 }
  0xa2   :  { %v189_v47 = vmul.f32 %v354_v44, %v348_v22  ;;  %v356_v48 = vpop.eup %355 }
  0xa3   :  { %361 = vtanh.f32 %v170_v45  ;;  %v358_v49 = vpop.eup %357  ;;  %v186_v51 = vmul.f32 %v356_v48, %v348_v22 }
  0xa4   :  { %363 = vtanh.f32 %v172_v46  ;;  %v205_v50 = vsel %vm98_vm0, %v189_v47, 0.0  ;;  %v188_v52 = vmul.f32 %v358_v49, %v348_v22  ;;  %v360_v54 = vpop.eup %359 }
  0xa5   :  { %206 = vadd.xlane.f32.xlu2 %v205_v50  ;;  %v196_v53 = vsel %vm98_vm0, %v186_v51, 0.0  ;;  %v191_v59 = vmul.f32 %v360_v54, %v348_v22 }
  0xa6   :  { %v202_v55 = vsel %vm98_vm0, %v188_v52, 0.0  ;;  %197 = vadd.xlane.f32.xlu0 %v196_v53 }
  0xa7   :  { %203 = vadd.xlane.f32.xlu1 %v202_v55  ;;  %v211_v62 = vsel %vm98_vm0, %v191_v59, 0.0 }
  0xa9   :  { %v362_v56 = vpop.eup %361 }
  0xaa   :  { %v364_v57 = vpop.eup %363  ;;  %v190_v58 = vmul.f32 %v362_v56, %v348_v22 }
  0xab   :  { %v192_v60 = vmul.f32 %v364_v57, %v348_v22 }
  0xac   :  { %v208_v61 = vsel %vm98_vm0, %v190_v58, 0.0 }
  0xad   :  { %209 = vadd.xlane.f32.xlu2 %v208_v61  ;;  %v214_v63 = vsel %vm98_vm0, %v192_v60, 0.0 }
  0xae   :  { %212 = vadd.xlane.f32.xlu0 %v211_v62 }
  0xaf   :  { %215 = vadd.xlane.f32.xlu1 %v214_v63 }
  0xc5   :  { %221 = vperm.xlu2 %346, %v217_v0  }
 0x111   :  { %v195_v1 = vpop.xlane.xlu0 %194 }
 0x112   :  { %v201_v2 = vpop.xlane.xlu1 %200  ;;  %v232_v7 = vperm.slane %v195_v1, %v219_v4 }
 0x113   :  { %v234_v10 = vperm.slane %v201_v2, %v219_v4 }
 0x118   :  { %v207_v5 = vpop.xlane.xlu2 %206 }
 0x119   :  { %v198_v6 = vpop.xlane.xlu0 %197  ;;  %v236_v15 = vperm.slane %v207_v5, %v219_v4 }
 0x11a   :  { %v204_v8 = vpop.xlane.xlu1 %203  ;;  %v233_v9 = vperm.slane %v198_v6, %v219_v4 }
 0x11b   :  { %v235_v11 = vperm.slane %v204_v8, %v219_v4 }
 0x11c   :  { %v241_v12 = vsel %vm240_vm1, %v233_v9, %v232_v7 }
 0x11d   :  { %v243_v13 = vsel %vm242_vm2, %v234_v10, %v241_v12 }
 0x11e   :  { %v245_v14 = vsel %vm244_vm3, %v235_v11, %v243_v13 }
 0x11f   :  { %v247_v18 = vsel %vm246_vm4, %v236_v15, %v245_v14 }
 0x120   :  { %v210_v16 = vpop.xlane.xlu2 %209 }
 0x121   :  { %v237_v17 = vperm.slane %v210_v16, %v219_v4  ;;  %v213_v19 = vpop.xlane.xlu0 %212 }
 0x122   :  { %v216_v21 = vpop.xlane.xlu1 %215  ;;  %v238_v22 = vperm.slane %v213_v19, %v219_v4 }
 0x123   :  { %v249_v20 = vsel %vm248_vm5, %v237_v17, %v247_v18  ;;  %v239_v23 = vperm.slane %v216_v21, %v219_v4 }
 0x124   :  { %v251_v24 = vsel %vm250_vm6, %v238_v22, %v249_v20 }
 0x125   :  { %v253_v26 = vsel %vm252_vm7, %v239_v23, %v251_v24 }
 0x128   :  { %v222_v25 = vpop.permute.xlu2 %221 }
 0x129   :  { %vm223_vm9 = vcmp.lt.s32.totalorder %v219_v4, %v222_v25 }
 0x12a   :  { %v255_v27 = vsel %vm223_vm9, %v253_v26, -inf }
 0x12b   :  { %v257_v28 = vsel %vm256_vm8, %v255_v27, -inf }
 0x12c   :  { %258 = vmax.xlane.f32.xlu0 %v257_v28 }
 0x19f   :  { %v259_v29 = vpop.xlane.xlu0 %258 }
 0x1a0   :  { %v260_v30 = vsub.f32 %v255_v27, %v259_v29 }
 0x1a2   :  { %v261_v31 = vmul.f32 1.442695, %v260_v30 }
 0x1a4   :  { %365 = vpow2.f32 %v261_v31 }
 0x1aa   :  { %v366_v32 = vpop.eup %365 }
 0x1ab   :  { %v263_v33 = vsel %vm256_vm8, %v366_v32, 0.0 }
 0x1ac   :  { %264 = vadd.xlane.f32.xlu1 %v263_v33 }
 0x21f   :  { %v265_v34 = vpop.xlane.xlu1 %264 }
 0x220   :  { %367 = vrcp.f32 %v265_v34  ;;  %v277_v38 = vand.u32 2147483648, %v265_v34  ;;  %v275_v40 = vand.u32 2147483647, %v265_v34  ;;  %vm271_vm11 = vweird.f32 %v265_v34 }
 0x222   :  { %v278_v42 = vor.u32 1.1754944e-38, %v277_v38  ;;  %vm276_vm13 = vcmp.eq.f32.partialorder %v275_v40, 8.507059e+37 }
 0x226   :  { %v368_v35 = vpop.eup %367 }
 0x227   :  { %v267_v36 = vmul.f32 %v368_v35, %v265_v34  ;;  %vm272_vm10 = vweird.f32 %v368_v35 }
 0x228   :  { %vm273_vm12 = vmor %vm271_vm11, %vm272_vm10 }
 0x229   :  { %v268_v37 = vsub.f32 1.0, %v267_v36 }
 0x22b   :  { %v269_v39 = vmul.f32 %v368_v35, %v268_v37 }
 0x22d   :  { %v270_v41 = vadd.f32 %v368_v35, %v269_v39 }
 0x22f   :  { %v274_v43 = vsel %vm273_vm12, %v368_v35, %v270_v41 }
 0x230   :  { %v279_v44 = vsel %vm276_vm13, %v278_v42, %v274_v43 }
 0x231   :  { %v280_v45 = vmul.f32 %v366_v32, %v279_v44 }
 0x233   :  { %281 = vst.msk [vmem:[#allocation7] sm:$0xff] %vm256_vm8, %v280_v45 }
 0x234   :  { %292 = dma.vmem_to_hbm [thread:$0]  %s288_s7, 128, %s290_s10, [#allocation4]  }
 0x235   :  { %445 = dma.done.wait [#allocation4], 128  }
 0x236   :  { %446 = vsyncadd [#allocation4], 4294967168 }
 0x237   :  { %297 = vsyncpa [#allocation3], 1 }
 0x238   :  { %298 = vsyncpa [#allocation6], 1 }
 0x239   :  { %299 = vsyncpa [#allocation4], 1 }

</bundles_post_ra>
